<compile_context>
chip_gen: v5e
topology: v5e:2x2
jax: 0.10.0
libtpu: 0.0.40
codegen_flags: <defaults>
</compile_context>

<pallas_src>
import jax
import jax.numpy as jnp
from jax.experimental import pallas as pl
from jax.experimental.pallas import tpu as pltpu

IN_FEATURES = 144
OUT_FEATURES = 512

# Batch tile for the grid path.  Conservative for v7x (64 MiB physical VMEM,
# 32 MiB scoped default): x tile 72 KiB + out tile 512 KiB, double-buffered,
# plus the resident 144 KiB weight -> ~1.5 MiB total.
DEFAULT_BATCH_TILE = 256


def _linear_hardswish_kernel(x_ref, w_ref, b_ref, o_ref):
    # v1 = x @ W + b : bf16 x bf16 MXU matmul with f32 accumulation.
    v1 = jnp.dot(x_ref[...], w_ref[...], preferred_element_type=jnp.float32)
    v1 = v1 + b_ref[...]
    # Hardswish epilogue (all f32 on the VPU):
    #   v2 = v1 * clamp(v1 + 3, 0, 6);  v3 = v2 / 6
    act = jnp.clip(v1 + 3.0, 0.0, 6.0)
    o_ref[...] = ((v1 * act) * (1.0 / 6.0)).astype(o_ref.dtype)


def linear_hardswish(x_bf16, w_t_bf16, b_f32_2d, *,
                     batch_tile=DEFAULT_BATCH_TILE,
                     out_dtype=jnp.float32):
    """x: (B, 144) bf16, w_t: (144, 512) bf16, b: (1, 512) f32 -> (B, 512) out_dtype."""
    B, K = x_bf16.shape
    N = w_t_bf16.shape[1]

    # Small batches: single block (B may be 1, not a multiple of 8 -> must
    # equal the full array dim).  Large batches: tile at a multiple of 8.
    tb = B if B <= batch_tile else batch_tile
    grid = (pl.cdiv(B, tb),)

    bytes_accessed = (
        x_bf16.size * x_bf16.dtype.itemsize
        + w_t_bf16.size * w_t_bf16.dtype.itemsize      # dominant transfer
        + b_f32_2d.size * b_f32_2d.dtype.itemsize
        + B * N * jnp.dtype(out_dtype).itemsize
    )
    cost = pl.CostEstimate(
        flops=2 * B * K * N,
        bytes_accessed=bytes_accessed,
        transcendentals=0,
    )

    # TODO(synk): when this layer is called repeatedly, hide the 144 KiB weight
    # DMA with a cross-call prefetch (P10: SEMAPHORE + VMEM outputs from a
    # preceding pallas_call); and on v5e/v6e an int8 weight (per-channel scale
    # in the f32 epilogue) would halve the weight DMA — do NOT port int8 to
    # v7x (no integer MXU path there).
    return pl.pallas_call(
        _linear_hardswish_kernel,
        out_shape=jax.ShapeDtypeStruct((B, N), out_dtype),
        grid=grid,
        in_specs=[
            # x: one batch tile per grid step, full K (lane dim = full array dim).
            pl.BlockSpec((tb, K), lambda i: (i, 0)),
            # weight: constant index_map -> DMA'd once, VMEM-resident across tiles.
            pl.BlockSpec((K, N), lambda i: (0, 0)),
            # bias: tiny, resident.
            pl.BlockSpec((1, N), lambda i: (0, 0)),
        ],
        # Lane-dense 512-wide output block -> unmasked stores.
        out_specs=pl.BlockSpec((tb, N), lambda i: (i, 0)),
        compiler_params=pltpu.CompilerParams(
            dimension_semantics=("parallel",),
            vmem_limit_bytes=32 * 1024 * 1024,
        ),
        cost_estimate=cost,
    )(x_bf16, w_t_bf16, b_f32_2d)


if __name__ == "__main__":
    key = jax.random.PRNGKey(0)
    k_x, k_w, k_b, k_xb = jax.random.split(key, 4)

    # Deterministic parameter init (PyTorch Linear-style uniform bound).
    bound = 1.0 / (IN_FEATURES ** 0.5)
    w = jax.random.uniform(k_w, (OUT_FEATURES, IN_FEATURES), jnp.float32, -bound, bound)
    b = jax.random.uniform(k_b, (OUT_FEATURES,), jnp.float32, -bound, bound)

    # One-time data prep (outside any per-call path): pre-transpose weight,
    # reshape bias to 2D, cast matmul operands to bf16.
    w_t_bf16 = jnp.transpose(w).astype(jnp.bfloat16)   # (144, 512) bf16
    b2d = b.reshape(1, OUT_FEATURES)                   # (1, 512) f32

    def ref_fn(x_bf16):
        # Reference uses the same bf16-rounded operands with f32 accumulation
        # so the comparison is apples-to-apples with the kernel.
        v1 = x_bf16.astype(jnp.float32) @ w_t_bf16.astype(jnp.float32) + b2d
        return v1 * jnp.clip(v1 + 3.0, 0.0, 6.0) / 6.0

    # --- Spec case: batch = 1 (torch.randn(1, 144)) -> single block, grid=(1,)
    x1 = jax.random.normal(k_x, (1, IN_FEATURES), jnp.float32).astype(jnp.bfloat16)
    out1 = jax.block_until_ready(linear_hardswish(x1, w_t_bf16, b2d))
    assert out1.shape == (1, OUT_FEATURES)
    assert jnp.allclose(out1, ref_fn(x1), atol=1e-4, rtol=1e-4)

    # --- Scaled-batch case: exercises the batch grid (2 tiles of 256 rows,
    # weight resident in VMEM across tiles, batch axis "parallel").
    xb = jax.random.normal(k_xb, (512, IN_FEATURES), jnp.float32).astype(jnp.bfloat16)
    outb = jax.block_until_ready(linear_hardswish(xb, w_t_bf16, b2d))
    assert outb.shape == (512, OUT_FEATURES)
    assert jnp.allclose(outb, ref_fn(xb), atol=1e-4, rtol=1e-4)

    print("KERNEL_OK")
</pallas_src>

<mosaic_0001>
module attributes {stable_mosaic.version = 11 : i64} {
  func.func @_linear_hardswish_kernel(%arg0: i32, %arg1: memref<1x144xbf16, #tpu.memory_space<vmem>>, %arg2: memref<144x512xbf16, #tpu.memory_space<vmem>>, %arg3: memref<1x512xf32, #tpu.memory_space<vmem>>, %arg4: memref<1x512xf32, #tpu.memory_space<vmem>>) attributes {dimension_semantics = [#tpu.dimension_semantics<parallel>], iteration_bounds = array<i64: 1>, scalar_prefetch = 0 : i64, scratch_operands = 0 : i64, tpu.core_type = #tpu.core_type<tc>, window_params = [{transform_indices = @transform_0, window_bounds = array<i64: 1, 144>}, {pipeline_mode = #tpu.pipeline_mode<synchronous>, transform_indices = @transform_1, window_bounds = array<i64: 144, 512>}, {pipeline_mode = #tpu.pipeline_mode<synchronous>, transform_indices = @transform_2, window_bounds = array<i64: 1, 512>}, {transform_indices = @transform_3, window_bounds = array<i64: 1, 512>}]} {
    %c0 = arith.constant 0 : index
    %c0_0 = arith.constant 0 : index
    %0 = vector.load %arg1[%c0, %c0_0] : memref<1x144xbf16, #tpu.memory_space<vmem>>, vector<1x144xbf16>
    %c0_1 = arith.constant 0 : index
    %c0_2 = arith.constant 0 : index
    %1 = vector.load %arg2[%c0_1, %c0_2] : memref<144x512xbf16, #tpu.memory_space<vmem>>, vector<144x512xbf16>
    %cst = arith.constant dense<0.000000e+00> : vector<1x512xf32>
    %2 = tpu.matmul %0, %1, %cst {dimension_numbers = #tpu.dot_dimension_numbers<[1], [0], [0], [1], [0, 0, 1, 1], [], []>} : vector<1x144xbf16>, vector<144x512xbf16>, vector<1x512xf32> -> vector<1x512xf32>
    %c0_3 = arith.constant 0 : index
    %c0_4 = arith.constant 0 : index
    %3 = vector.load %arg3[%c0_3, %c0_4] : memref<1x512xf32, #tpu.memory_space<vmem>>, vector<1x512xf32>
    %4 = arith.addf %2, %3 : vector<1x512xf32>
    %cst_5 = arith.constant 3.000000e+00 : f32
    %5 = vector.broadcast %cst_5 : f32 to vector<1x512xf32>
    %6 = arith.addf %4, %5 : vector<1x512xf32>
    %cst_6 = arith.constant 0.000000e+00 : f32
    %cst_7 = arith.constant 6.000000e+00 : f32
    %7 = vector.broadcast %cst_6 : f32 to vector<1x512xf32>
    %8 = arith.maximumf %7, %6 : vector<1x512xf32>
    %9 = vector.broadcast %cst_7 : f32 to vector<1x512xf32>
    %10 = arith.minimumf %9, %8 : vector<1x512xf32>
    %11 = arith.mulf %4, %10 : vector<1x512xf32>
    %cst_8 = arith.constant 0.166666672 : f32
    %12 = vector.broadcast %cst_8 : f32 to vector<1x512xf32>
    %13 = arith.mulf %11, %12 : vector<1x512xf32>
    %c0_9 = arith.constant 0 : index
    %c0_10 = arith.constant 0 : index
    %14 = vector.load %arg4[%c0_9, %c0_10] : memref<1x512xf32, #tpu.memory_space<vmem>>, vector<1x512xf32>
    tpu.vector_store %arg4[%c0_9, %c0_10], %13 {strides = array<i32>} : memref<1x512xf32, #tpu.memory_space<vmem>>, vector<1x512xf32>,
    return
  }
  func.func @transform_0(%arg0: i32) -> (i32, i32) {
    %c0_i32 = arith.constant 0 : i32
    %c0_i32_0 = arith.constant 0 : i32
    return %arg0, %c0_i32 : i32, i32
  }
  func.func @transform_1(%arg0: i32) -> (i32, i32) {
    %c0_i32 = arith.constant 0 : i32
    %c0_i32_0 = arith.constant 0 : i32
    %c0_i32_1 = arith.constant 0 : i32
    return %c0_i32, %c0_i32_0 : i32, i32
  }
  func.func @transform_2(%arg0: i32) -> (i32, i32) {
    %c0_i32 = arith.constant 0 : i32
    %c0_i32_0 = arith.constant 0 : i32
    %c0_i32_1 = arith.constant 0 : i32
    return %c0_i32, %c0_i32_0 : i32, i32
  }
  func.func @transform_3(%arg0: i32) -> (i32, i32) {
    %c0_i32 = arith.constant 0 : i32
    %c0_i32_0 = arith.constant 0 : i32
    return %arg0, %c0_i32 : i32, i32
  }
}

</mosaic_0001>

<bundles_post_ra>
// kernel: tpu_custom_call.1
= control target key start
LH: loop header
LB: loop body
LE: loop exit
PB: predicated region body
PF: predicated region fallthrough
CT: control target
= control target key end

     0   :  { %8 = vsyncpa [#allocation3], 0  ;;  %s795_s0 = inlined_call_operand.hbm [shape: bf16[1,144], index: 0, kind: input, shape index: {}]   ;;  %s796_s1 = inlined_call_operand.hbm [shape: bf16[144,512], index: 1, kind: input, shape index: {}]   ;;  %s797_s2 = inlined_call_operand.hbm [shape: f32[1,512], index: 2, kind: input, shape index: {}]   ;;  %s798_s3 = inlined_call_operand.hbm [shape: f32[1,512], index: 3, kind: output, shape index: {}]  }
   0x1   :  { %9 = vsyncpa [#allocation6], 0  ;;  %s26_s14 = sshll.u32 %s796_s1, 4  ;;  %s27_s14 = int_to_ptr.hbm [resolvable:$true] %s26_s14 }
   0x2   :  { %10 = vsyncpa [#allocation4], 0  ;;  %s747_s15 = smov [#allocation5]   ;;  %s16_s19 = sshll.u32 %s795_s0, 4  ;;  %s17_s19 = int_to_ptr.hbm [resolvable:$true] %s16_s19 }
   0x3   :  { %s28_s16 = sshll.u32 %s747_s15, 4  ;;  %s748_s20 = smov 256   ;;  %s29_s16 = int_to_ptr.vmem [resolvable:$true] %s28_s16 }
   0x4   :  { %s749_s21 = smov 16   ;;  %s750_s22 = smov [#allocation2]  }
   0x5   :  { %34 = dma.hbm_to_vmem [thread:$0]  %s27_s14, 4608, %s29_s16, [#allocation6], %s748_s20, %s748_s20, %s749_s21  }
   0x6   :  { %s18_s23 = sshll.u32 %s750_s22, 4  ;;  %s40_s26 = sshll.u32 %s797_s2, 4  ;;  %s19_s23 = int_to_ptr.vmem [resolvable:$true] %s18_s23  ;;  %s41_s26 = int_to_ptr.hbm [resolvable:$true] %s40_s26 }
   0x7   :  { %21 = dma.hbm_to_vmem [thread:$0]  %s17_s19, 32, %s19_s23, [#allocation3]  }
   0x8   :  { %s751_s1 = smov [#allocation7]  }
   0x9   :  { %s42_s27 = sshll.u32 %s751_s1, 4  ;;  %s43_s27 = int_to_ptr.vmem [resolvable:$true] %s42_s27 }
   0xa   :  { %45 = dma.hbm_to_vmem [thread:$0]  %s41_s26, 64, %s43_s27, [#allocation6]  }
   0xb   :  { %741 = dma.done.wait [#allocation3], 32  }
   0xc   :  { %742 = vsyncadd [#allocation3], 4294967264 }
   0xd   :  { %743 = dma.done.wait [#allocation6], 4672  }
   0xe   :  { %744 = vsyncadd [#allocation6], 4294962624  ;;  %v569_v0 = vld [vmem:[#allocation5 + $0xe0] sm:$0xf]  ;;  %v633_v1 = vld [vmem:[#allocation5 + $0xec] sm:$0xf0] }
   0xf   :  { %v585_v2 = vld [vmem:[#allocation5 + $0x100] sm:$0xf]  ;;  %v570_v3 = vor.u32 %v633_v1, %v569_v0  ;;  %v637_v4 = vld [vmem:[#allocation5 + $0x10c] sm:$0xf0]  ;;  %v631_v5 = vld [vmem:[#allocation5 + $0xe4] sm:$0xf] }
  0x10   :  { %v571_v6 = vld [vmem:[#allocation5 + $0xf0] sm:$0xf0]  ;;  %v586_v7 = vor.u32 %v637_v4, %v585_v2  ;;  %v577_v9 = vld [vmem:[#allocation5 + $0xe8] sm:$0xf]  ;;  %v634_v10 = vld [vmem:[#allocation5 + $0xf4] sm:$0xf0] }
  0x11   :  { %v574_v8 = vor.u32 %v631_v5, %v571_v6  ;;  %v553_v11 = vld [vmem:[#allocation5 + $0xc0] sm:$0xf]  ;;  %294 = vmatpush.bf16.msra.mxu0 %v570_v3  ;;  %v578_v12 = vor.u32 %v634_v10, %v577_v9  ;;  %v629_v13 = vld [vmem:[#allocation5 + $0xcc] sm:$0xf0]  ;;  %v627_v14 = vld [vmem:[#allocation5 + $0xc4] sm:$0xf] }
  0x12   :  { %v555_v15 = vld [vmem:[#allocation5 + $0xd0] sm:$0xf0]  ;;  %314 = vmatpush.bf16.msra.mxu1 %v586_v7  ;;  %v554_v16 = vor.u32 %v629_v13, %v553_v11  ;;  %v561_v18 = vld [vmem:[#allocation5 + $0xc8] sm:$0xf]  ;;  %v630_v19 = vld [vmem:[#allocation5 + $0xd4] sm:$0xf0] }
  0x13   :  { %320 = vmatpush.bf16.msra.mxu2 %v574_v8  ;;  %v558_v17 = vor.u32 %v627_v14, %v555_v15  ;;  %v593_v20 = vld [vmem:[#allocation5 + $0x108] sm:$0xf]  ;;  %v562_v21 = vor.u32 %v630_v19, %v561_v18  ;;  %v638_v22 = vld [vmem:[#allocation5 + $0x114] sm:$0xf0]  ;;  %v632_v23 = vld [vmem:[#allocation5 + $0xec] sm:$0xf] }
  0x14   :  { %v579_v24 = vld [vmem:[#allocation5 + $0xf8] sm:$0xf0]  ;;  %v594_v25 = vor.u32 %v638_v22, %v593_v20  ;;  %v537_v27 = vld [vmem:[#allocation5 + $0xa0] sm:$0xf]  ;;  %v625_v28 = vld [vmem:[#allocation5 + $0xac] sm:$0xf0] }
  0x15   :  { %v582_v26 = vor.u32 %v632_v23, %v579_v24  ;;  %v623_v29 = vld [vmem:[#allocation5 + $0xa4] sm:$0xf]  ;;  %295 = vmatpush.bf16.msra.mxu0 %v554_v16  ;;  %v538_v30 = vor.u32 %v625_v28, %v537_v27  ;;  %v539_v31 = vld [vmem:[#allocation5 + $0xb0] sm:$0xf0]  ;;  %v545_v32 = vld [vmem:[#allocation5 + $0xa8] sm:$0xf] }
  0x16   :  { %346 = vmatpush.bf16.msrb.mxu1 %v578_v12  ;;  %v626_v33 = vld [vmem:[#allocation5 + $0xb4] sm:$0xf0]  ;;  %366 = vmatpush.bf16.msra.mxu3 %v594_v25  ;;  %v542_v34 = vor.u32 %v623_v29, %v539_v31  ;;  %v628_v35 = vld [vmem:[#allocation5 + $0xcc] sm:$0xf]  ;;  %v563_v36 = vld [vmem:[#allocation5 + $0xd8] sm:$0xf0] }
  0x17   :  { %321 = vmatpush.bf16.msra.mxu2 %v558_v17  ;;  %v521_v37 = vld [vmem:[#allocation5 + $0x80] sm:$0xf]  ;;  %v546_v38 = vor.u32 %v626_v33, %v545_v32  ;;  %v566_v39 = vor.u32 %v628_v35, %v563_v36  ;;  %v621_v40 = vld [vmem:[#allocation5 + $0x8c] sm:$0xf0]  ;;  %v619_v41 = vld [vmem:[#allocation5 + $0x84] sm:$0xf] }
  0x18   :  { %v523_v42 = vld [vmem:[#allocation5 + $0x90] sm:$0xf0]  ;;  %v529_v43 = vld [vmem:[#allocation5 + $0x88] sm:$0xf]  ;;  %v622_v44 = vld [vmem:[#allocation5 + $0x94] sm:$0xf0]  ;;  %v522_v46 = vor.u32 %v621_v40, %v521_v37 }
  0x19   :  { %v624_v45 = vld [vmem:[#allocation5 + $0xac] sm:$0xf]  ;;  %296 = vmatpush.bf16.msra.mxu0 %v538_v30  ;;  %v547_v47 = vld [vmem:[#allocation5 + $0xb8] sm:$0xf0]  ;;  %v526_v48 = vor.u32 %v619_v41, %v523_v42  ;;  %v505_v49 = vld [vmem:[#allocation5 + $0x60] sm:$0xf]  ;;  %v530_v52 = vor.u32 %v622_v44, %v529_v43 }
  0x1a   :  { %347 = vmatpush.bf16.msrb.mxu1 %v562_v21  ;;  %372 = vmatpush.bf16.msrb.mxu3 %v582_v26  ;;  %v617_v50 = vld [vmem:[#allocation5 + $0x6c] sm:$0xf0]  ;;  %v59_v51 = vld [vmem:[#allocation2] sm:$0x3]  ;;  %v550_v53 = vor.u32 %v624_v45, %v547_v47  ;;  %v615_v54 = vld [vmem:[#allocation5 + $0x64] sm:$0xf] }
  0x1b   :  { %322 = vmatpush.bf16.msra.mxu2 %v542_v34  ;;  %98 = vst [vmem:[#allocation1] ss:$9 sm:$0xff] %v59_v51  ;;  %v507_v55 = vld [vmem:[#allocation5 + $0x70] sm:$0xf0]  ;;  %v620_v56 = vld [vmem:[#allocation5 + $0x8c] sm:$0xf]  ;;  %v506_v58 = vor.u32 %v617_v50, %v505_v49 }
  0x1c   :  { %v531_v57 = vld [vmem:[#allocation5 + $0x98] sm:$0xf0]  ;;  %v513_v59 = vld [vmem:[#allocation5 + $0x68] sm:$0xf]  ;;  %v618_v60 = vld [vmem:[#allocation5 + $0x74] sm:$0xf0]  ;;  %v510_v61 = vor.u32 %v615_v54, %v507_v55 }
  0x1d   :  { %297 = vmatpush.bf16.msra.mxu0 %v522_v46  ;;  %v489_v62 = vld [vmem:[#allocation5 + $0x40] sm:$0xf]  ;;  %v613_v63 = vld [vmem:[#allocation5 + $0x4c] sm:$0xf0]  ;;  %v534_v0 = vor.u32 %v620_v56, %v531_v57  ;;  %v611_v1 = vld [vmem:[#allocation5 + $0x44] sm:$0xf]  ;;  %v514_v3 = vor.u32 %v618_v60, %v513_v59 }
  0x1e   :  { %348 = vmatpush.bf16.msrb.mxu1 %v546_v38  ;;  %373 = vmatpush.bf16.msrb.mxu3 %v566_v39  ;;  %v491_v2 = vld [vmem:[#allocation5 + $0x50] sm:$0xf0]  ;;  %vm291_vm0 = vcmask 130048   ;;  %v616_v4 = vld [vmem:[#allocation5 + $0x6c] sm:$0xf]  ;;  %v490_v6 = vor.u32 %v613_v63, %v489_v62  ;;  %vm425_vm1 = vcmask 1040384  }
  0x1f   :  { %323 = vmatpush.bf16.msra.mxu2 %v526_v48  ;;  %v515_v5 = vld [vmem:[#allocation5 + $0x78] sm:$0xf0]  ;;  %v497_v7 = vld [vmem:[#allocation5 + $0x48] sm:$0xf]  ;;  %v614_v8 = vld [vmem:[#allocation5 + $0x54] sm:$0xf0]  ;;  %v494_v10 = vor.u32 %v611_v1, %v491_v2 }
  0x20   :  { %v473_v11 = vld [vmem:[#allocation5 + $0x20] sm:$0xf]  ;;  %v609_v12 = vld [vmem:[#allocation5 + $0x2c] sm:$0xf0]  ;;  %v518_v13 = vor.u32 %v616_v4, %v515_v5  ;;  %v607_v14 = vld [vmem:[#allocation5 + $0x24] sm:$0xf]  ;;  %v498_v16 = vor.u32 %v614_v8, %v497_v7 }
  0x21   :  { %298 = vmatpush.bf16.msra.mxu0 %v506_v58  ;;  %v475_v15 = vld [vmem:[#allocation5 + $0x30] sm:$0xf0]  ;;  %v612_v17 = vld [vmem:[#allocation5 + $0x4c] sm:$0xf]  ;;  %v499_v18 = vld [vmem:[#allocation5 + $0x58] sm:$0xf0]  ;;  %v474_v19 = vor.u32 %v609_v12, %v473_v11 }
  0x22   :  { %349 = vmatpush.bf16.msrb.mxu1 %v530_v52  ;;  %374 = vmatpush.bf16.msrb.mxu3 %v550_v53  ;;  %v782_v9 = vld [vmem:[#allocation1 + $0x9] sm:$0xff]  ;;  %v481_v20 = vld [vmem:[#allocation5 + $0x28] sm:$0xf]  ;;  %v610_v21 = vld [vmem:[#allocation5 + $0x34] sm:$0xf0]  ;;  %v478_v23 = vor.u32 %v607_v14, %v475_v15  ;;  %v502_v27 = vor.u32 %v612_v17, %v499_v18  ;;  %vm427_vm2 = vcmask 1042434  }
  0x23   :  { %324 = vmatpush.bf16.msra.mxu2 %v510_v61  ;;  %599 = vmatmul.msk.bf16.vlgmr.msra.gmra.mxu1 %vm291_vm0, %v782_v9  ;;  %v457_v22 = vld [vmem:[#allocation5] sm:$0xf]  ;;  %v605_v24 = vld [vmem:[#allocation5 + $0xc] sm:$0xf0]  ;;  %v603_v25 = vld [vmem:[#allocation5 + $0x4] sm:$0xf]  ;;  %v482_v31 = vor.u32 %v610_v21, %v481_v20 }
  0x24   :  { %601 = vmatmul.msk.bf16.vlgmr.msra.gmra.mxu3 %vm291_vm0, %v782_v9  ;;  %v459_v26 = vld [vmem:[#allocation5 + $0x10] sm:$0xf0]  ;;  %v608_v28 = vld [vmem:[#allocation5 + $0x2c] sm:$0xf]  ;;  %v595_v30 = vld [vmem:[#allocation5 + $0x118] sm:$0xf0]  ;;  %v458_v35 = vor.u32 %v605_v24, %v457_v22 }
  0x25   :  { %299 = vmatpush.bf16.msra.mxu0 %v490_v6  ;;  %v636_v29 = vld [vmem:[#allocation5 + $0x10c] sm:$0xf]  ;;  %v483_v32 = vld [vmem:[#allocation5 + $0x38] sm:$0xf0]  ;;  %v635_v33 = vld [vmem:[#allocation5 + $0x104] sm:$0xf]  ;;  %v462_v38 = vor.u32 %v603_v25, %v459_v26 }
  0x26   :  { %375 = vmatpush.bf16.msrb.mxu3 %v534_v0  ;;  %350 = vmatpush.bf16.msrb.mxu1 %v514_v3  ;;  %v587_v34 = vld [vmem:[#allocation5 + $0x110] sm:$0xf0]  ;;  %v465_v36 = vld [vmem:[#allocation5 + $0x8] sm:$0xf]  ;;  %v606_v37 = vld [vmem:[#allocation5 + $0x14] sm:$0xf0]  ;;  %v598_v39 = vor.u32 %v636_v29, %v595_v30  ;;  %v486_v40 = vor.u32 %v608_v28, %v483_v32  ;;  %v432_v30 = vlaneseq }
  0x27   :  { %325 = vmatpush.bf16.msra.mxu2 %v494_v10  ;;  %v590_v41 = vor.u32 %v635_v33, %v587_v34  ;;  %v466_v42 = vor.u32 %v606_v37, %v465_v36  ;;  %v604_v43 = vld [vmem:[#allocation5 + $0xc] sm:$0xf]  ;;  %v467_v44 = vld [vmem:[#allocation5 + $0x18] sm:$0xf0]  ;;  %v96_v51 = vld [vmem:[#allocation7] sm:$0xf] }
  0x28   :  { %v99_v45 = vld [vmem:[#allocation1] sm:$0xff]  ;;  %v470_v46 = vor.u32 %v604_v43, %v467_v44  ;;  %v285_v54 = vperm.slane %v96_v51, 2  ;;  %v283_v56 = vperm.slane %v96_v51, 0  ;;  %v286_v59 = vperm.slane %v96_v51, 3  ;;  %s752_s0 = smov [#allocation8]   ;;  %s444_s30 = sshll.u32 %s798_s3, 4  ;;  %s445_s30 = int_to_ptr.hbm [resolvable:$true] %s444_s30 }
  0x29   :  { %300 = vmatpush.bf16.msra.mxu0 %v474_v19  ;;  %v284_v6 = vperm.slane %v96_v51, 1  ;;  %s442_s2 = sshll.u32 %s752_s0, 4  ;;  %vm429_vm3 = vcmask 1041408   ;;  %vm434_vm4 = vcmp.lt.s32.totalorder %v432_v30, 512  ;;  %s443_s2 = int_to_ptr.vmem [resolvable:$true] %s442_s2 }
  0x2a   :  { %376 = vmatpush.bf16.msrb.mxu3 %v518_v13  ;;  %351 = vmatpush.bf16.msrb.mxu1 %v498_v16 }
  0x2b   :  { %326 = vmatpush.bf16.msra.mxu2 %v478_v23 }
  0x2d   :  { %301 = vmatpush.bf16.msra.mxu0 %v458_v35 }
  0x2e   :  { %377 = vmatpush.bf16.msrb.mxu3 %v502_v27  ;;  %352 = vmatpush.bf16.msrb.mxu1 %v482_v31 }
  0x2f   :  { %327 = vmatpush.bf16.msra.mxu2 %v462_v38 }
  0x30   :  { %302 = vmatmul.bf16.vlgmr.msra.gmra.mxu0 %v99_v45 }
  0x31   :  { %392 = vmatpush.bf16.msrb.mxu0 %v598_v39 }
  0x32   :  { %378 = vmatpush.bf16.msrb.mxu3 %v486_v40  ;;  %353 = vmatpush.bf16.msrb.mxu1 %v466_v42 }
  0x33   :  { %340 = vmatpush.bf16.msrb.mxu2 %v590_v41 }
  0x34   :  { %328 = vmatmul.bf16.vlgmr.msra.gmra.mxu2 %v99_v45 }
  0x35   :  { %354 = vmatmul.bf16.vlgmr.msrb.gmra.mxu1 %v99_v45 }
  0x36   :  { %379 = vmatpush.bf16.msrb.mxu3 %v470_v46 }
  0x39   :  { %380 = vmatmul.bf16.vlgmr.msrb.gmra.mxu3 %v99_v45 }
  0x40   :  { %602 = vmatmul.msk.bf16.vlgmr.msrb.gmra.mxu0 %vm291_vm0, %v782_v9 }
  0x44   :  { %600 = vmatmul.msk.bf16.vlgmr.msrb.gmra.mxu2 %vm291_vm0, %v782_v9 }
  0xa0   :  { %v316_v47 = vpop.f32.mrf.mxu1 }
  0xa7   :  { %v368_v48 = vpop.f32.mrf.mxu3 }
  0xa8   :  { %v318_v49 = vpop.f32.mrf.mxu1 }
  0xad   :  { %v303_v50 = vpop.f32.mrf.mxu0 }
  0xae   :  { %v304_v61 = vadd.f32 %v303_v50, %v283_v56 }
  0xaf   :  { %v370_v52 = vpop.f32.mrf.mxu3 }
  0xb0   :  { %v317_v2 = vadd.f32 %v316_v47, %v304_v61 }
  0xb2   :  { %v355_v53 = vpop.f32.mrf.mxu1  ;;  %v398_v8 = vadd.f32 3.0, %v317_v2 }
  0xb3   :  { %v356_v57 = vadd.f32 %v355_v53, %v285_v54 }
  0xb4   :  { %v402_v15 = vmax.f32 %v398_v8, 0.0 }
  0xb5   :  { %v305_v58 = vpop.f32.mrf.mxu0  ;;  %v369_v62 = vadd.f32 %v368_v48, %v356_v57 }
  0xb6   :  { %v406_v21 = vmin.f32 %v402_v15, 6.0 }
  0xb7   :  { %v329_v55 = vpop.f32.mrf.mxu2  ;;  %v400_v3 = vadd.f32 3.0, %v369_v62 }
  0xb8   :  { %v330_v12 = vadd.f32 %v329_v55, %v284_v6  ;;  %v410_v27 = vmul.f32 %v406_v21, %v317_v2 }
  0xb9   :  { %v404_v9 = vmax.f32 %v400_v3, 0.0 }
  0xba   :  { %v357_v60 = vpop.f32.mrf.mxu1  ;;  %v414_v33 = vmul.f32 0.16666667, %v410_v27 }
  0xbb   :  { %v408_v16 = vmin.f32 %v404_v9, 6.0 }
  0xbc   :  { %v381_v63 = vpop.f32.mrf.mxu3 }
  0xbd   :  { %v382_v0 = vadd.f32 %v381_v63, %v286_v59  ;;  %v394_v4 = vpop.f32.mrf.mxu0  ;;  %v412_v22 = vmul.f32 %v408_v16, %v369_v62 }
  0xbf   :  { %v331_v1 = vpop.f32.mrf.mxu2  ;;  %v395_v5 = vadd.f32 %v394_v4, %v382_v0  ;;  %v416_v28 = vmul.f32 0.16666667, %v412_v22 }
  0xc1   :  { %v401_v7 = vadd.f32 3.0, %v395_v5  ;;  %v423_v34 = vrot.slane %v416_v28, 6 }
  0xc3   :  { %v405_v11 = vmax.f32 %v401_v7, 0.0 }
  0xc4   :  { %v383_v10 = vpop.f32.mrf.mxu3 }
  0xc5   :  { %v409_v13 = vmin.f32 %v405_v11, 6.0  ;;  %v396_v18 = vpop.f32.mrf.mxu0 }
  0xc7   :  { %v342_v14 = vpop.f32.mrf.mxu2  ;;  %v413_v19 = vmul.f32 %v409_v13, %v395_v5 }
  0xc8   :  { %v343_v17 = vadd.f32 %v342_v14, %v330_v12 }
  0xc9   :  { %v417_v24 = vmul.f32 0.16666667, %v413_v19 }
  0xca   :  { %v399_v20 = vadd.f32 3.0, %v343_v17 }
  0xcb   :  { %v424_v31 = vrot.slane %v417_v24, 5 }
  0xcc   :  { %v403_v23 = vmax.f32 %v399_v20, 0.0 }
  0xcd   :  { %v428_v37 = vsel %vm427_vm2, %v423_v34, %v424_v31 }
  0xce   :  { %v407_v25 = vmin.f32 %v403_v23, 6.0 }
  0xcf   :  { %v344_v26 = vpop.f32.mrf.mxu2 }
  0xd0   :  { %v411_v29 = vmul.f32 %v407_v25, %v343_v17 }
  0xd2   :  { %v415_v32 = vmul.f32 0.16666667, %v411_v29 }
  0xd4   :  { %v422_v35 = vrot.slane %v415_v32, 7 }
  0xd6   :  { %v426_v36 = vsel %vm425_vm1, %v414_v33, %v422_v35 }
  0xd7   :  { %v430_v38 = vsel %vm429_vm3, %v426_v36, %v428_v37 }
  0xd8   :  { %436 = vst.msk [vmem:[#allocation8] sm:$0xf] %vm434_vm4, %v430_v38 }
  0xd9   :  { %447 = dma.vmem_to_hbm [thread:$0]  %s443_s2, 64, %s445_s30, [#allocation4]  }
  0xda   :  { %745 = dma.done.wait [#allocation4], 64  }
  0xdb   :  { %746 = vsyncadd [#allocation4], 4294967232 }
  0xdc   :  { %452 = vsyncpa [#allocation3], 1 }
  0xdd   :  { %453 = vsyncpa [#allocation6], 1 }
  0xde   :  { %454 = vsyncpa [#allocation4], 1 }

</bundles_post_ra>
